<compile_context>
chip_gen: v7x
topology: tpu7x:2x2x1
jax: 0.10.0
libtpu: 0.0.40
codegen_flags: <defaults>
</compile_context>

<pallas_src>
import numpy as np

import jax
import jax.numpy as jnp
from jax.experimental import pallas as pl
from jax.experimental.pallas import tpu as pltpu


# ---------------------------------------------------------------------------
# Kernel bodies
# ---------------------------------------------------------------------------
def _projection_kernel_direct(x_ref, wT_ref, b_ref, o_ref):
    # Single K tile: plain MXU matmul + bias, f32 accumulation.
    # x_ref : (1, TT, E)   wT_ref: (E, TN)   b_ref: (1, TN)   o_ref: (1, TT, TN)
    y = jnp.dot(x_ref[0], wT_ref[...], preferred_element_type=jnp.float32)
    o_ref[0] = (y + b_ref[0]).astype(o_ref.dtype)


def _projection_kernel_kacc(x_ref, wT_ref, b_ref, o_ref, acc_ref):
    # K-tiled reduction over E with an f32 VMEM accumulator.
    # x_ref : (1, TT, TK)  wT_ref: (TK, TN)  b_ref: (1, TN)
    # o_ref : (1, TT, TN)  acc_ref: (TT, TN) f32 scratch
    k = pl.program_id(3)

    @pl.when(k == 0)
    def _init():
        acc_ref[...] = jnp.zeros_like(acc_ref)

    acc_ref[...] += jnp.dot(x_ref[0], wT_ref[...],
                            preferred_element_type=jnp.float32)

    @pl.when(k == pl.num_programs(3) - 1)
    def _finalize():
        o_ref[0] = (acc_ref[...] + b_ref[0]).astype(o_ref.dtype)


# ---------------------------------------------------------------------------
# Host-side tiling helpers
# ---------------------------------------------------------------------------
def _divisors_desc(n):
    return [d for d in range(n, 0, -1) if n % d == 0]


def _pick_tile(total, limit, aligns=(8,)):
    """Largest divisor of `total` that is <= limit and aligned to one of `aligns`.

    Falls back to the full dimension, which is always a legal Pallas block
    (the (8,128) rule allows full-extent blocks)."""
    limit = max(int(limit), 1)
    for align in aligns:
        for d in _divisors_desc(total):
            if d <= limit and d % align == 0:
                return d
    return total


def _vmem_capacity_bytes():
    """Physical VMEM per core; conservative (v7x) fallback if query fails."""
    try:
        info = pltpu.get_tpu_info()
        cap = getattr(info, "vmem_capacity_bytes", None)
        if cap:
            return int(cap)
    except Exception:
        pass
    return 64 << 20


# ---------------------------------------------------------------------------
# Param preparation (hoisted out of the per-call path)
# ---------------------------------------------------------------------------
def prepare_output_projection_params(params, compute_dtype=None):
    """Pre-transpose (and optionally cast) the nn.Linear weight once."""
    wT = jnp.asarray(params["w"]).T                      # (E, P)
    if compute_dtype is not None:
        wT = wT.astype(compute_dtype)
    b = jnp.asarray(params["b"]).astype(jnp.float32).reshape(1, -1)
    return {"wT": wT, "b": b}


# ---------------------------------------------------------------------------
# Wrapper: Linear (Pallas) + non-overlapping FoldNd (pure re-layout)
# ---------------------------------------------------------------------------
def output_projection(x, params, *, image_size, patch_size, out_channels,
                      compute_dtype=None, out_dtype=None,
                      max_tt=1024, max_tn=512, max_tk=2048):
    """Pallas implementation of OutputProjection.forward.

    x: (B, T, E).  Returns (B, out_channels, D, H, W)."""
    B, T, E = x.shape
    pd, ph, pw = patch_size
    D, H, W = image_size
    nd, nh, nw = D // pd, H // ph, W // pw
    assert nd * pd == D and nh * ph == H and nw * pw == W
    assert nd * nh * nw == T, "token count must equal the number of patches"
    P = pd * ph * pw * out_channels

    # Weight / bias (prefer pre-prepared params to avoid per-call .T/.astype).
    if "wT" in params:
        wT, b = params["wT"], params["b"]
    else:
        prep = prepare_output_projection_params(params, compute_dtype)
        wT, b = prep["wT"], prep["b"]
    if compute_dtype is not None and wT.dtype != compute_dtype:
        wT = wT.astype(compute_dtype)
    assert wT.shape == (E, P) and b.shape == (1, P)

    x_in = x.astype(compute_dtype) if compute_dtype is not None else x
    if out_dtype is None:
        out_dtype = x.dtype

    # ---------------- tile selection ----------------
    low_prec = jnp.dtype(x_in.dtype).itemsize < 4
    n_aligns = (256, 128) if low_prec else (128,)
    # Feature (N) tile: 128-multiple (lane-dense, unmasked stores) or full P.
    tn = _pick_tile(P, max_tn, aligns=n_aligns)
    # Reduction (K) tile over E: only tiled when E exceeds max_tk.
    tk = _pick_tile(E, max_tk, aligns=n_aligns)
    gj, gk = P // tn, E // tk
    # TODO(synk): if P < 128 at production scale, present a lane-dense (1, TT*P)
    # output slab instead of a (1, TT, P) block to avoid masked vst.msk stores.

    # Sequence (M) tile: sized from the per-generation VMEM budget.
    vmem_cap = _vmem_capacity_bytes()
    budget = max(8 << 20, min(vmem_cap // 3, 40 << 20))   # ~21 MiB on v7x, 40 MiB on v5e/v6e
    x_bytes = jnp.dtype(x_in.dtype).itemsize
    w_bytes = jnp.dtype(wT.dtype).itemsize
    o_bytes = jnp.dtype(out_dtype).itemsize
    w_bufs = 1 if (gj == 1 and gk == 1) else 2            # single-buffered when constant
    b_bufs = 1 if gj == 1 else 2
    fixed_bytes = w_bufs * tk * tn * w_bytes + b_bufs * tn * 4
    per_tt = 2 * tk * x_bytes + 2 * tn * o_bytes + (tn * 4 if gk > 1 else 0)
    tt_limit = min(max_tt, max(8, (budget - fixed_bytes) // max(per_tt, 1)))
    tt = _pick_tile(T, tt_limit, aligns=(256, 8) if low_prec else (8,))
    gt = T // tt

    grid = (B, gt, gj, gk)   # reduction axis last; all others parallel (megacore on v7x)

    working_set = fixed_bytes + tt * per_tt
    vmem_limit = int(min(max(int(0.9 * vmem_cap), 32 << 20),
                         max(48 << 20, 2 * working_set + (8 << 20))))

    cost = pl.CostEstimate(
        flops=2 * B * T * E * P,
        transcendentals=0,
        bytes_accessed=int(x_in.size * x_bytes * gj
                           + wT.size * w_bytes * (1 if (gj == 1 and gk == 1) else B * gt)
                           + b.size * 4
                           + B * T * P * o_bytes),
    )

    if gk == 1:
        kernel = _projection_kernel_direct
        scratch = []
    else:
        kernel = _projection_kernel_kacc
        scratch = [pltpu.VMEM((tt, tn), jnp.float32)]

    def _make_specs(single_buffer_constants):
        w_kwargs, b_kwargs = {}, {}
        if single_buffer_constants:
            if gj == 1 and gk == 1:
                w_kwargs["pipeline_mode"] = pl.Buffered(1)   # constant block
            if gj == 1:
                b_kwargs["pipeline_mode"] = pl.Buffered(1)   # constant block
        in_specs = [
            pl.BlockSpec((1, tt, tk), lambda bi, ti, j, k: (bi, ti, k)),     # x tile
            pl.BlockSpec((tk, tn), lambda bi, ti, j, k: (k, j), **w_kwargs),  # weight^T
            pl.BlockSpec((1, tn), lambda bi, ti, j, k: (0, j), **b_kwargs),   # bias
        ]
        out_specs = pl.BlockSpec((1, tt, tn), lambda bi, ti, j, k: (bi, ti, j))
        return in_specs, out_specs

    def _run(single_buffer_constants):
        in_specs, out_specs = _make_specs(single_buffer_constants)
        return pl.pallas_call(
            kernel,
            out_shape=jax.ShapeDtypeStruct((B, T, P), out_dtype),
            grid_spec=pltpu.PrefetchScalarGridSpec(
                num_scalar_prefetch=0,
                grid=grid,
                in_specs=in_specs,
                out_specs=out_specs,
                scratch_shapes=scratch),
            compiler_params=pltpu.CompilerParams(
                dimension_semantics=("parallel", "parallel", "parallel", "arbitrary"),
                vmem_limit_bytes=vmem_limit),
            cost_estimate=cost,
        )(x_in, wT, b)

    try:
        y = _run(single_buffer_constants=True)
    except Exception:
        if gj != 1:
            raise
        # pipeline_mode=pl.Buffered(1) unsupported on this JAX build -> default buffering.
        y = _run(single_buffer_constants=False)

    # permute(0,2,1) + FoldNd(kernel_size=stride=patch_size): with non-overlapping
    # patches this is a pure re-layout of the projection output.
    # Feature index p decomposes c-major, kernel offsets row-major:
    #   p = ((c*pd + kd)*ph + kh)*pw + kw ; patch index l = (bd*nh + bh)*nw + bw.
    # TODO(synk): fuse this re-layout into the kernel store path (see module docstring).
    y = y.reshape(B, nd, nh, nw, out_channels, pd, ph, pw)
    y = y.transpose(0, 4, 1, 5, 2, 6, 3, 7)          # (B, C, nd, pd, nh, ph, nw, pw)
    return y.reshape(B, out_channels, D, H, W)


# ---------------------------------------------------------------------------
# Independent (loop-based) reference mirroring the PyTorch forward
# ---------------------------------------------------------------------------
def reference_output_projection(x, params, *, image_size, patch_size, out_channels):
    x = np.asarray(x, dtype=np.float64)
    w = np.asarray(params["w"], dtype=np.float64)
    b = np.asarray(params["b"], dtype=np.float64)
    B, T, E = x.shape
    pd, ph, pw = patch_size
    D, H, W = image_size
    nd, nh, nw = D // pd, H // ph, W // pw

    y = x @ w.T + b                                   # (B, T, P)  Linear
    out = np.zeros((B, out_channels, D, H, W), dtype=np.float64)
    for l in range(T):                                # FoldNd (kernel == stride)
        bd, rem = divmod(l, nh * nw)
        bh, bw_ = divmod(rem, nw)
        for c in range(out_channels):
            for kd in range(pd):
                for kh in range(ph):
                    for kw in range(pw):
                        p = ((c * pd + kd) * ph + kh) * pw + kw
                        out[:, c, bd * pd + kd, bh * ph + kh, bw_ * pw + kw] = y[:, l, p]
    return out


# ---------------------------------------------------------------------------
# Demo / self-test
# ---------------------------------------------------------------------------
if __name__ == "__main__":
    def run_case(name, *, image_size, patch_size, out_channels, embed_size, B,
                 compute_dtype=None, out_dtype=None, atol=1e-5, rtol=1e-5,
                 **tile_overrides):
        pd, ph, pw = patch_size
        D, H, W = image_size
        T = (D // pd) * (H // ph) * (W // pw)
        P = pd * ph * pw * out_channels

        key = jax.random.PRNGKey(0)
        kx, kw, kb = jax.random.split(key, 3)
        x = jax.random.normal(kx, (B, T, embed_size), jnp.float32)
        params = {
            "w": 0.02 * jax.random.normal(kw, (P, embed_size), jnp.float32),
            "b": 0.02 * jax.random.normal(kb, (P,), jnp.float32),
        }
        prepared = prepare_output_projection_params(params, compute_dtype)

        out = output_projection(
            x, prepared, image_size=image_size, patch_size=patch_size,
            out_channels=out_channels, compute_dtype=compute_dtype,
            out_dtype=out_dtype, **tile_overrides)
        out = jax.block_until_ready(out)
        assert out.shape == (B, out_channels) + tuple(image_size), (name, out.shape)

        ref = reference_output_projection(
            x, params, image_size=image_size, patch_size=patch_size,
            out_channels=out_channels)
        got = np.asarray(out, dtype=np.float64)
        err = np.max(np.abs(got - ref))
        assert np.allclose(got, ref, atol=atol, rtol=rtol), f"{name}: max err {err}"

    # Case 1: small f32 path (matches PyTorch numerics); single weight tile,
    # constant weight/bias single-buffered.
    run_case("f32", image_size=(8, 8, 8), patch_size=(2, 2, 2), out_channels=4,
             embed_size=32, B=2, atol=1e-5, rtol=1e-5)

    # Case 2: bf16 operands, f32 accumulation, bf16 output (deliberate precision
    # tradeoff + halved output write bytes).
    run_case("bf16", image_size=(8, 8, 8), patch_size=(2, 2, 2), out_channels=4,
             embed_size=32, B=2, compute_dtype=jnp.bfloat16,
             out_dtype=jnp.bfloat16, atol=2e-2, rtol=2e-2)

    # Case 3: exercise the feature-tiled (gj>1) + K-reduction (gk>1) accumulator path
    # by forcing small TN/TK tiles on a larger E/P configuration.
    run_case("tiled-NK f32", image_size=(8, 8, 8), patch_size=(2, 2, 2),
             out_channels=32, embed_size=256, B=2,
             max_tn=128, max_tk=128, atol=1e-4, rtol=1e-4)

    print("KERNEL_OK")
</pallas_src>

<mosaic_0001>
module attributes {stable_mosaic.version = 11 : i64} {
  func.func @_projection_kernel_direct(%arg0: i32, %arg1: i32, %arg2: i32, %arg3: i32, %arg4: memref<1x64x32xf32, #tpu.memory_space<vmem>>, %arg5: memref<32x32xf32, #tpu.memory_space<vmem>>, %arg6: memref<1x32xf32, #tpu.memory_space<vmem>>, %arg7: memref<1x64x32xf32, #tpu.memory_space<vmem>>) attributes {dimension_semantics = [#tpu.dimension_semantics<parallel>, #tpu.dimension_semantics<parallel>, #tpu.dimension_semantics<parallel>, #tpu.dimension_semantics<arbitrary>], iteration_bounds = array<i64: 2, 1, 1, 1>, scalar_prefetch = 0 : i64, scratch_operands = 0 : i64, tpu.core_type = #tpu.core_type<tc>, window_params = [{transform_indices = @transform_0, window_bounds = array<i64: 1, 64, 32>}, {pipeline_mode = #tpu.pipeline_mode<synchronous>, transform_indices = @transform_1, window_bounds = array<i64: 32, 32>}, {pipeline_mode = #tpu.pipeline_mode<synchronous>, transform_indices = @transform_2, window_bounds = array<i64: 1, 32>}, {transform_indices = @transform_3, window_bounds = array<i64: 1, 64, 32>}]} {
    %c0 = arith.constant 0 : index
    %c0_0 = arith.constant 0 : index
    %c0_1 = arith.constant 0 : index
    %0 = vector.load %arg4[%c0, %c0_0, %c0_1] : memref<1x64x32xf32, #tpu.memory_space<vmem>>, vector<1x64x32xf32>
    %1 = vector.shape_cast %0 : vector<1x64x32xf32> to vector<64x32xf32>
    %c0_2 = arith.constant 0 : index
    %c0_3 = arith.constant 0 : index
    %2 = vector.load %arg5[%c0_2, %c0_3] : memref<32x32xf32, #tpu.memory_space<vmem>>, vector<32x32xf32>
    %cst = arith.constant dense<0.000000e+00> : vector<64x32xf32>
    %3 = tpu.matmul %1, %2, %cst {dimension_numbers = #tpu.dot_dimension_numbers<[1], [0], [0], [1], [0, 0, 1, 1], [], []>} : vector<64x32xf32>, vector<32x32xf32>, vector<64x32xf32> -> vector<64x32xf32>
    %c0_4 = arith.constant 0 : index
    %c0_5 = arith.constant 0 : index
    %4 = vector.load %arg6[%c0_4, %c0_5] : memref<1x32xf32, #tpu.memory_space<vmem>>, vector<1x32xf32>
    %5 = vector.shape_cast %4 : vector<1x32xf32> to vector<32xf32>
    %6 = vector.shape_cast %5 : vector<32xf32> to vector<1x32xf32>
    %7 = vector.broadcast %6 : vector<1x32xf32> to vector<64x32xf32>
    %8 = arith.addf %3, %7 : vector<64x32xf32>
    %c0_6 = arith.constant 0 : index
    %c0_7 = arith.constant 0 : index
    %c0_8 = arith.constant 0 : index
    %9 = vector.load %arg7[%c0_6, %c0_7, %c0_8] : memref<1x64x32xf32, #tpu.memory_space<vmem>>, vector<1x64x32xf32>
    %10 = vector.shape_cast %9 : vector<1x64x32xf32> to vector<64x32xf32>
    %11 = vector.shape_cast %8 : vector<64x32xf32> to vector<1x64x32xf32>
    tpu.vector_store %arg7[%c0_6, %c0_7, %c0_8], %11 {strides = array<i32>} : memref<1x64x32xf32, #tpu.memory_space<vmem>>, vector<1x64x32xf32>,
    return
  }
  func.func @transform_0(%arg0: i32, %arg1: i32, %arg2: i32, %arg3: i32) -> (i32, i32, i32) {
    %c0_i32 = arith.constant 0 : i32
    return %arg0, %arg1, %arg3 : i32, i32, i32
  }
  func.func @transform_1(%arg0: i32, %arg1: i32, %arg2: i32, %arg3: i32) -> (i32, i32) {
    %c0_i32 = arith.constant 0 : i32
    return %arg3, %arg2 : i32, i32
  }
  func.func @transform_2(%arg0: i32, %arg1: i32, %arg2: i32, %arg3: i32) -> (i32, i32) {
    %c0_i32 = arith.constant 0 : i32
    %c0_i32_0 = arith.constant 0 : i32
    return %c0_i32, %arg2 : i32, i32
  }
  func.func @transform_3(%arg0: i32, %arg1: i32, %arg2: i32, %arg3: i32) -> (i32, i32, i32) {
    %c0_i32 = arith.constant 0 : i32
    return %arg0, %arg1, %arg2 : i32, i32, i32
  }
}

module attributes {stable_mosaic.version = 11 : i64} {
  func.func @_projection_kernel_direct(%arg0: i32, %arg1: i32, %arg2: i32, %arg3: i32, %arg4: memref<1x64x32xf32, #tpu.memory_space<vmem>>, %arg5: memref<32x32xf32, #tpu.memory_space<vmem>>, %arg6: memref<1x32xf32, #tpu.memory_space<vmem>>, %arg7: memref<1x64x32xf32, #tpu.memory_space<vmem>>) attributes {dimension_semantics = [#tpu.dimension_semantics<parallel>, #tpu.dimension_semantics<parallel>, #tpu.dimension_semantics<parallel>, #tpu.dimension_semantics<arbitrary>], iteration_bounds = array<i64: 2, 1, 1, 1>, scalar_prefetch = 0 : i64, scratch_operands = 0 : i64, tpu.core_type = #tpu.core_type<tc>, window_params = [{transform_indices = @transform_0, window_bounds = array<i64: 1, 64, 32>}, {transform_indices = @transform_1, window_bounds = array<i64: 32, 32>}, {transform_indices = @transform_2, window_bounds = array<i64: 1, 32>}, {transform_indices = @transform_3, window_bounds = array<i64: 1, 64, 32>}]} {
    %c0 = arith.constant 0 : index
    %c0_0 = arith.constant 0 : index
    %c0_1 = arith.constant 0 : index
    %0 = vector.load %arg4[%c0, %c0_0, %c0_1] : memref<1x64x32xf32, #tpu.memory_space<vmem>>, vector<1x64x32xf32>
    %1 = vector.shape_cast %0 : vector<1x64x32xf32> to vector<64x32xf32>
    %c0_2 = arith.constant 0 : index
    %c0_3 = arith.constant 0 : index
    %2 = vector.load %arg5[%c0_2, %c0_3] : memref<32x32xf32, #tpu.memory_space<vmem>>, vector<32x32xf32>
    %cst = arith.constant dense<0.000000e+00> : vector<64x32xf32>
    %3 = tpu.matmul %1, %2, %cst {dimension_numbers = #tpu.dot_dimension_numbers<[1], [0], [0], [1], [0, 0, 1, 1], [], []>} : vector<64x32xf32>, vector<32x32xf32>, vector<64x32xf32> -> vector<64x32xf32>
    %c0_4 = arith.constant 0 : index
    %c0_5 = arith.constant 0 : index
    %4 = vector.load %arg6[%c0_4, %c0_5] : memref<1x32xf32, #tpu.memory_space<vmem>>, vector<1x32xf32>
    %5 = vector.shape_cast %4 : vector<1x32xf32> to vector<32xf32>
    %6 = vector.shape_cast %5 : vector<32xf32> to vector<1x32xf32>
    %7 = vector.broadcast %6 : vector<1x32xf32> to vector<64x32xf32>
    %8 = arith.addf %3, %7 : vector<64x32xf32>
    %c0_6 = arith.constant 0 : index
    %c0_7 = arith.constant 0 : index
    %c0_8 = arith.constant 0 : index
    %9 = vector.load %arg7[%c0_6, %c0_7, %c0_8] : memref<1x64x32xf32, #tpu.memory_space<vmem>>, vector<1x64x32xf32>
    %10 = vector.shape_cast %9 : vector<1x64x32xf32> to vector<64x32xf32>
    %11 = vector.shape_cast %8 : vector<64x32xf32> to vector<1x64x32xf32>
    tpu.vector_store %arg7[%c0_6, %c0_7, %c0_8], %11 {strides = array<i32>} : memref<1x64x32xf32, #tpu.memory_space<vmem>>, vector<1x64x32xf32>,
    return
  }
  func.func @transform_0(%arg0: i32, %arg1: i32, %arg2: i32, %arg3: i32) -> (i32, i32, i32) {
    %c0_i32 = arith.constant 0 : i32
    return %arg0, %arg1, %arg3 : i32, i32, i32
  }
  func.func @transform_1(%arg0: i32, %arg1: i32, %arg2: i32, %arg3: i32) -> (i32, i32) {
    %c0_i32 = arith.constant 0 : i32
    return %arg3, %arg2 : i32, i32
  }
  func.func @transform_2(%arg0: i32, %arg1: i32, %arg2: i32, %arg3: i32) -> (i32, i32) {
    %c0_i32 = arith.constant 0 : i32
    %c0_i32_0 = arith.constant 0 : i32
    return %c0_i32, %arg2 : i32, i32
  }
  func.func @transform_3(%arg0: i32, %arg1: i32, %arg2: i32, %arg3: i32) -> (i32, i32, i32) {
    %c0_i32 = arith.constant 0 : i32
    return %arg0, %arg1, %arg2 : i32, i32, i32
  }
}

</mosaic_0001>

<bundles_post_ra>
// kernel: tpu_custom_call.1
= control target key start
LH: loop header
LB: loop body
LE: loop exit
PB: predicated region body
PF: predicated region fallthrough
CT: control target
= control target key end

     0   :  { %s719_s12 = smov 0   ;;  %s721_s13 = smov 0   ;;  %s786_s0 = inlined_call_operand.vmem [shape: f32[2,64,32], index: 0, kind: input, shape index: {}]   ;;  %s787_s1 = inlined_call_operand.vmem [shape: f32[32,32], index: 1, kind: input, shape index: {}]   ;;  %s788_s2 = inlined_call_operand.vmem [shape: f32[1,32], index: 2, kind: input, shape index: {}]   ;;  %s789_s3 = inlined_call_operand.vmem [shape: f32[2,64,32], index: 3, kind: output, shape index: {}]  }
   0x1   :  { %s723_s14 = smov 0  }
   0x2 LB: > { %s39_s15 = sadd.s32 1, %s693_s13  ;;  %p589_p0 = scmp.ge.s32.totalorder %s697_s14, 1  ;;  %s697_s14 = sphi %s723_s14, %s13_s14   ;;  %s693_s13 = sphi %s721_s13, %s791_s13   ;;  %s689_s12 = sphi %s719_s12, %s790_s12  }
   0x3   : > { %p41_p1 = scmp.ge.s32.totalorder %s39_s15, 2  ;;  %p203_p2 = scmp.lt.s32.totalorder %s697_s14, 3 }
   0x5   : > { %s793_s15 = smov (%p41_p1, %s39_s15), 0  ;;  %p204_p3 = pnand %p589_p0, %p203_p2 }
   0x6   : > { %v298_v0 = vld [vmem:[%s787_s1] sm:$0xff] (!%p204_p3)  ;;  %v299_v1 = vld [vmem:[%s787_s1 + $0x8] sm:$0xff] (!%p204_p3)  ;;  %v300_v2 = vld [vmem:[%s787_s1 + $0x10] sm:$0xff] (!%p204_p3)  ;;  %p253_p4 = scmp.lt.s32.totalorder (!%p204_p3), %s689_s12, 1  ;;  %vm309_vm0 = vcmask (!%p204_p3), 261120  }
   0x7   : > { %207 = sbr.rel (%p204_p3) target bundleno = 240 (0xf0), region = 32  ;;  %v639_v3 = vpack.c.bf16 (!%p204_p3), %v299_v1, %v298_v0  ;;  %v301_v4 = vld [vmem:[%s787_s1 + $0x18] sm:$0xff] (!%p204_p3)  ;;  %v594_v14 = vld [vmem:[%s788_s2] ss:$0 sm:$0xff] (!%p204_p3) }
   0x8   : > { %v643_v5 = vpack.c.bf16 (!%p204_p3), %v301_v4, %v300_v2 }
   0x9   : > { %640 = vmatprep.subr.bf16.mxu0 (!%p204_p3), %v639_v3  ;;  %647 = vmatprep.subr.bf16.mxu1 (!%p204_p3), %v639_v3 }
   0xa   : > { %642 = vmatpush3.bf16.msra.mxu0 (!%p204_p3), %v639_v3  ;;  %649 = vmatpush3.bf16.msra.mxu1 (!%p204_p3), %v639_v3 }
   0xb   : > { %644 = vmatprep.subr.bf16.mxu0 (!%p204_p3), %v643_v5  ;;  %648 = vmatprep.subr.bf16.mxu1 (!%p204_p3), %v643_v5 }
   0xe   : > { %s795_s12 = smov (!%p253_p4, %s689_s12), 1  ;;  %646 = vmatpush3.bf16.msra.mxu0 %v643_v5  ;;  %650 = vmatpush3.bf16.msra.mxu1 %v643_v5 }
   0xf   : > { %s605_s24 = sshll.u32 %s795_s12, 6 }
  0x10   : > { %s263_s27 = scalar_lea.vmem %s786_s0, %s605_s24  ;;  %s288_s5 = scalar_lea.vmem %s789_s3, %s605_s24 }
  0x11   : > { %v290_v6 = vld [vmem:[%s263_s27] sm:$0xff]  ;;  %v291_v8 = vld [vmem:[%s263_s27 + $0x8] sm:$0xff]  ;;  %v292_v10 = vld [vmem:[%s263_s27 + $0x10] sm:$0xff] }
  0x12   : > { %v294_v7 = vld [vmem:[%s263_s27 + $0x20] sm:$0xff]  ;;  %627 = vmatprep.mubr.msk.f32.mxu0 %vm309_vm0, %v290_v6  ;;  %v295_v9 = vld [vmem:[%s263_s27 + $0x28] sm:$0xff]  ;;  %v296_v11 = vld [vmem:[%s263_s27 + $0x30] sm:$0xff] }
  0x13   : > { %633 = vmatprep.mubr.msk.f32.mxu1 %vm309_vm0, %v294_v7  ;;  %628 = vmatmul.mubr.msk.f32.vlgmr.msra.gmra.mrb[0].mxu0 %vm309_vm0, %v291_v8  ;;  %v293_v12 = vld [vmem:[%s263_s27 + $0x18] sm:$0xff] }
  0x14   : > { %634 = vmatmul.mubr.msk.f32.vlgmr.msra.gmra.mrb[0].mxu1 %vm309_vm0, %v295_v9  ;;  %630 = vmatprep.mubr.msk.f32.mxu0 %vm309_vm0, %v292_v10  ;;  %v297_v13 = vld [vmem:[%s263_s27 + $0x38] sm:$0xff] }
  0x15   : > { %636 = vmatprep.mubr.msk.f32.mxu1 %vm309_vm0, %v296_v11 }
  0x17   : > { %631 = vmatmul.mubr.msk.f32.gmra.mrb[2].mxu0 %vm309_vm0, %v293_v12 }
  0x18   : > { %637 = vmatmul.mubr.msk.f32.gmra.mrb[2].mxu1 %vm309_vm0, %v297_v13 }
  0xe6   : > { %v629_v15 = vpop.f32.mrb[0].mxu0 }
  0xe7   : > { %v635_v16 = vpop.f32.mrb[0].mxu1  ;;  %v406_v17 = vadd.f32 %v629_v15, %v594_v14  ;;  %v400_v19 = vpop.f32.mrb[1].mxu0 }
  0xe8   : > { %v426_v18 = vadd.f32 %v635_v16, %v594_v14  ;;  %v420_v20 = vpop.f32.mrb[1].mxu1  ;;  %v401_v21 = vadd.f32 %v594_v14, %v400_v19 }
  0xe9   : > { %v421_v22 = vadd.f32 %v594_v14, %v420_v20  ;;  %440 = vst.msk [vmem:[%s288_s5 + $0x8] sm:$0xff] %vm309_vm0, %v406_v17 }
  0xea   : > { %444 = vst.msk [vmem:[%s288_s5 + $0x28] sm:$0xff] %vm309_vm0, %v426_v18  ;;  %439 = vst.msk [vmem:[%s288_s5] sm:$0xff] %vm309_vm0, %v401_v21  ;;  %v632_v23 = vpop.f32.mrb[2].mxu0 }
  0xeb   : > { %443 = vst.msk [vmem:[%s288_s5 + $0x20] sm:$0xff] %vm309_vm0, %v421_v22  ;;  %v638_v24 = vpop.f32.mrb[2].mxu1  ;;  %v416_v25 = vadd.f32 %v632_v23, %v594_v14  ;;  %v410_v27 = vpop.f32.mrb[3].mxu0 }
  0xec   : > { %v436_v26 = vadd.f32 %v638_v24, %v594_v14  ;;  %v430_v28 = vpop.f32.mrb[3].mxu1  ;;  %v411_v29 = vadd.f32 %v594_v14, %v410_v27 }
  0xed   : > { %v431_v30 = vadd.f32 %v594_v14, %v430_v28  ;;  %442 = vst.msk [vmem:[%s288_s5 + $0x18] sm:$0xff] %vm309_vm0, %v416_v25 }
  0xee   : > { %446 = vst.msk [vmem:[%s288_s5 + $0x38] sm:$0xff] %vm309_vm0, %v436_v26  ;;  %441 = vst.msk [vmem:[%s288_s5 + $0x10] sm:$0xff] %vm309_vm0, %v411_v29 }
  0xef   : > { %445 = vst.msk [vmem:[%s288_s5 + $0x30] sm:$0xff] %vm309_vm0, %v431_v30 }
  0xf0 PF: > { %s13_s14 = sadd.s32 1, %s697_s14   ;;  %s790_s12 = smov %s693_s13 }
  0xf1   : > { %p10_p5 = scmp.ge.s32.totalorder %s13_s14, 4   ;;  %s791_s13 = smov %s793_s15 }
  0xf3   :  { %12 = sbr.rel (!%p10_p5) target bundleno = 2 (0x2), region = 68 }

// kernel: tpu_custom_call.1
= control target key start
LH: loop header
LB: loop body
LE: loop exit
PB: predicated region body
PF: predicated region fallthrough
CT: control target
= control target key end

     0   :  { %s719_s12 = smov 0   ;;  %s721_s13 = smov 0   ;;  %s786_s0 = inlined_call_operand.vmem [shape: f32[2,64,32], index: 0, kind: input, shape index: {}]   ;;  %s787_s1 = inlined_call_operand.vmem [shape: f32[32,32], index: 1, kind: input, shape index: {}]   ;;  %s788_s2 = inlined_call_operand.vmem [shape: f32[1,32], index: 2, kind: input, shape index: {}]   ;;  %s789_s3 = inlined_call_operand.vmem [shape: f32[2,64,32], index: 3, kind: output, shape index: {}]  }
   0x1   :  { %s723_s14 = smov 0  }
   0x2 LB: > { %s39_s15 = sadd.s32 1, %s693_s13  ;;  %p589_p0 = scmp.ge.s32.totalorder %s697_s14, 1  ;;  %s697_s14 = sphi %s723_s14, %s13_s14   ;;  %s693_s13 = sphi %s721_s13, %s791_s13   ;;  %s689_s12 = sphi %s719_s12, %s790_s12  }
   0x3   : > { %p41_p1 = scmp.ge.s32.totalorder %s39_s15, 2  ;;  %p203_p2 = scmp.lt.s32.totalorder %s697_s14, 3 }
   0x5   : > { %s793_s15 = smov (%p41_p1, %s39_s15), 0  ;;  %p204_p3 = pnand %p589_p0, %p203_p2 }
   0x6   : > { %v298_v0 = vld [vmem:[%s787_s1] sm:$0xff] (!%p204_p3)  ;;  %v299_v1 = vld [vmem:[%s787_s1 + $0x8] sm:$0xff] (!%p204_p3)  ;;  %v300_v2 = vld [vmem:[%s787_s1 + $0x10] sm:$0xff] (!%p204_p3)  ;;  %p253_p4 = scmp.lt.s32.totalorder (!%p204_p3), %s689_s12, 1  ;;  %vm309_vm0 = vcmask (!%p204_p3), 261120  }
   0x7   : > { %207 = sbr.rel (%p204_p3) target bundleno = 240 (0xf0), region = 32  ;;  %v639_v3 = vpack.c.bf16 (!%p204_p3), %v299_v1, %v298_v0  ;;  %v301_v4 = vld [vmem:[%s787_s1 + $0x18] sm:$0xff] (!%p204_p3)  ;;  %v594_v14 = vld [vmem:[%s788_s2] ss:$0 sm:$0xff] (!%p204_p3) }
   0x8   : > { %v643_v5 = vpack.c.bf16 (!%p204_p3), %v301_v4, %v300_v2 }
   0x9   : > { %640 = vmatprep.subr.bf16.mxu0 (!%p204_p3), %v639_v3  ;;  %647 = vmatprep.subr.bf16.mxu1 (!%p204_p3), %v639_v3 }
   0xa   : > { %642 = vmatpush3.bf16.msra.mxu0 (!%p204_p3), %v639_v3  ;;  %649 = vmatpush3.bf16.msra.mxu1 (!%p204_p3), %v639_v3 }
   0xb   : > { %644 = vmatprep.subr.bf16.mxu0 (!%p204_p3), %v643_v5  ;;  %648 = vmatprep.subr.bf16.mxu1 (!%p204_p3), %v643_v5 }
   0xe   : > { %s795_s12 = smov (!%p253_p4, %s689_s12), 1  ;;  %646 = vmatpush3.bf16.msra.mxu0 %v643_v5  ;;  %650 = vmatpush3.bf16.msra.mxu1 %v643_v5 }
   0xf   : > { %s605_s24 = sshll.u32 %s795_s12, 6 }
  0x10   : > { %s263_s27 = scalar_lea.vmem %s786_s0, %s605_s24  ;;  %s288_s5 = scalar_lea.vmem %s789_s3, %s605_s24 }
  0x11   : > { %v290_v6 = vld [vmem:[%s263_s27] sm:$0xff]  ;;  %v291_v8 = vld [vmem:[%s263_s27 + $0x8] sm:$0xff]  ;;  %v292_v10 = vld [vmem:[%s263_s27 + $0x10] sm:$0xff] }
  0x12   : > { %v294_v7 = vld [vmem:[%s263_s27 + $0x20] sm:$0xff]  ;;  %627 = vmatprep.mubr.msk.f32.mxu0 %vm309_vm0, %v290_v6  ;;  %v295_v9 = vld [vmem:[%s263_s27 + $0x28] sm:$0xff]  ;;  %v296_v11 = vld [vmem:[%s263_s27 + $0x30] sm:$0xff] }
  0x13   : > { %633 = vmatprep.mubr.msk.f32.mxu1 %vm309_vm0, %v294_v7  ;;  %628 = vmatmul.mubr.msk.f32.vlgmr.msra.gmra.mrb[0].mxu0 %vm309_vm0, %v291_v8  ;;  %v293_v12 = vld [vmem:[%s263_s27 + $0x18] sm:$0xff] }
  0x14   : > { %634 = vmatmul.mubr.msk.f32.vlgmr.msra.gmra.mrb[0].mxu1 %vm309_vm0, %v295_v9  ;;  %630 = vmatprep.mubr.msk.f32.mxu0 %vm309_vm0, %v292_v10  ;;  %v297_v13 = vld [vmem:[%s263_s27 + $0x38] sm:$0xff] }
  0x15   : > { %636 = vmatprep.mubr.msk.f32.mxu1 %vm309_vm0, %v296_v11 }
  0x17   : > { %631 = vmatmul.mubr.msk.f32.gmra.mrb[2].mxu0 %vm309_vm0, %v293_v12 }
  0x18   : > { %637 = vmatmul.mubr.msk.f32.gmra.mrb[2].mxu1 %vm309_vm0, %v297_v13 }
  0xe6   : > { %v629_v15 = vpop.f32.mrb[0].mxu0 }
  0xe7   : > { %v635_v16 = vpop.f32.mrb[0].mxu1  ;;  %v406_v17 = vadd.f32 %v629_v15, %v594_v14  ;;  %v400_v19 = vpop.f32.mrb[1].mxu0 }
  0xe8   : > { %v426_v18 = vadd.f32 %v635_v16, %v594_v14  ;;  %v420_v20 = vpop.f32.mrb[1].mxu1  ;;  %v401_v21 = vadd.f32 %v594_v14, %v400_v19 }
  0xe9   : > { %v421_v22 = vadd.f32 %v594_v14, %v420_v20  ;;  %440 = vst.msk [vmem:[%s288_s5 + $0x8] sm:$0xff] %vm309_vm0, %v406_v17 }
  0xea   : > { %444 = vst.msk [vmem:[%s288_s5 + $0x28] sm:$0xff] %vm309_vm0, %v426_v18  ;;  %439 = vst.msk [vmem:[%s288_s5] sm:$0xff] %vm309_vm0, %v401_v21  ;;  %v632_v23 = vpop.f32.mrb[2].mxu0 }
  0xeb   : > { %443 = vst.msk [vmem:[%s288_s5 + $0x20] sm:$0xff] %vm309_vm0, %v421_v22  ;;  %v638_v24 = vpop.f32.mrb[2].mxu1  ;;  %v416_v25 = vadd.f32 %v632_v23, %v594_v14  ;;  %v410_v27 = vpop.f32.mrb[3].mxu0 }
  0xec   : > { %v436_v26 = vadd.f32 %v638_v24, %v594_v14  ;;  %v430_v28 = vpop.f32.mrb[3].mxu1  ;;  %v411_v29 = vadd.f32 %v594_v14, %v410_v27 }
  0xed   : > { %v431_v30 = vadd.f32 %v594_v14, %v430_v28  ;;  %442 = vst.msk [vmem:[%s288_s5 + $0x18] sm:$0xff] %vm309_vm0, %v416_v25 }
  0xee   : > { %446 = vst.msk [vmem:[%s288_s5 + $0x38] sm:$0xff] %vm309_vm0, %v436_v26  ;;  %441 = vst.msk [vmem:[%s288_s5 + $0x10] sm:$0xff] %vm309_vm0, %v411_v29 }
  0xef   : > { %445 = vst.msk [vmem:[%s288_s5 + $0x30] sm:$0xff] %vm309_vm0, %v431_v30 }
  0xf0 PF: > { %s13_s14 = sadd.s32 1, %s697_s14   ;;  %s790_s12 = smov %s693_s13 }
  0xf1   : > { %p10_p5 = scmp.ge.s32.totalorder %s13_s14, 4   ;;  %s791_s13 = smov %s793_s15 }
  0xf3   :  { %12 = sbr.rel (!%p10_p5) target bundleno = 2 (0x2), region = 68 }

</bundles_post_ra>
